<compile_context>
chip_gen: v7x
topology: tpu7x:2x2x1
jax: 0.10.0
libtpu: 0.0.40
codegen_flags: <defaults>
</compile_context>

<pallas_src>
import jax
import jax.numpy as jnp
from jax import lax
from jax.experimental import pallas as pl
from jax.experimental.pallas import tpu as pltpu


def _haar_split_kernel(er_ref, od_ref, s_sum_ref, s_sel_ref, l_ref, h_ref):
    """er_ref/od_ref: (tr, Wt) even / odd image rows for one lane tile."""
    er = er_ref[...]
    rsum = er + od_ref[...]
    l = jnp.dot(rsum, s_sum_ref[...],
                preferred_element_type=jnp.float32,
                precision=lax.Precision.HIGHEST)          # (a+b+c+d)/2
    a = jnp.dot(er, s_sel_ref[...],
                preferred_element_type=jnp.float32,
                precision=lax.Precision.HIGHEST)          # a = x[2i,2j]
    h = 2.0 * a - l                                       # (3a-b-c-d)/2
    l_ref[...] = l.astype(l_ref.dtype)
    h_ref[...] = h.astype(h_ref.dtype)


def _haar_full_kernel(x_ref, s_sum_ref, s_sel_ref, l_ref, h_ref):
    """Fallback for W % 128 != 0: x_ref is (tr, 2W), split lanes in-kernel."""
    w = s_sum_ref.shape[0]            # image width W (static)
    er = x_ref[:, :w]                 # even image rows   x[2i,   :]
    od = x_ref[:, w:]                 # odd image rows    x[2i+1, :]
    rsum = er + od
    l = jnp.dot(rsum, s_sum_ref[...],
                preferred_element_type=jnp.float32,
                precision=lax.Precision.HIGHEST)
    a = jnp.dot(er, s_sel_ref[...],
                preferred_element_type=jnp.float32,
                precision=lax.Precision.HIGHEST)
    h = 2.0 * a - l
    l_ref[...] = l.astype(l_ref.dtype)
    h_ref[...] = h.astype(h_ref.dtype)


def _make_sel_matrices(kw, dtype):
    """Column-pair combine matrices, entries {0, 0.5, 1} (exact)."""
    cols = jnp.arange(kw)[:, None]
    outs = jnp.arange(kw // 2)[None, :]
    s_sum = jnp.where(cols // 2 == outs, 0.5, 0.0).astype(dtype)   # (kw, kw/2)
    s_sel = jnp.where(cols == 2 * outs, 1.0, 0.0).astype(dtype)    # (kw, kw/2)
    return s_sum, s_sel


def first_order_wavelet_transform(x, *, row_tile=None, vmem_budget_bytes=None):
    """x: [B, C, H, W], H and W even. Returns (L, H) each [B, C, H/2, W/2]."""
    B, C, H, W = x.shape
    assert H % 2 == 0 and W % 2 == 0, "even spatial dims required"
    H2, W2 = H // 2, W // 2
    R2 = B * C * H2                        # one flat row per 2x2 block-row
    itm = jnp.dtype(x.dtype).itemsize

    # ---- per-generation VMEM budgeting -----------------------------------
    try:
        vmem_cap = int(pltpu.get_tpu_info().vmem_capacity_bytes)
    except Exception:                      # no hw query available -> conservative
        vmem_cap = 64 * 1024 * 1024
    if vmem_budget_bytes is None:
        vmem_budget_bytes = min(vmem_cap // 2, 48 * 1024 * 1024)

    # ---- path / lane-tile selection ---------------------------------------
    # split path needs Wt % 128 == 0 and (Wt == W or Wt % 256 == 0) so that
    # both input (tr, Wt) and output (tr, Wt/2) blocks satisfy the (8,128)
    # tiling rule.
    if W % 256 == 0 and W > 256:
        wt, split = 256, True
    elif W % 128 == 0:
        wt, split = W, True
    else:
        wt, split = None, False            # full-width fallback (e.g. W = 16)

    kw = wt if split else W                # matmul contraction width per step
    kw2 = kw // 2
    n_w = (W // wt) if split else 1        # number of lane tiles

    # ---- row-tile sizing (blocks + resident S + in-kernel temporaries) ----
    # per-row-of-tr bytes: double-buffered in/out blocks + rsum/l/a/h temps.
    per_tr = (2 * (2 * kw + 2 * kw2) + 3 * kw + 3 * kw2) * itm
    s_buf_bytes = 2 * 2 * kw * kw2 * itm   # two S matrices x 2 pipeline buffers

    cap_tr = max(8, int((vmem_budget_bytes - s_buf_bytes) // per_tr))

    # keep the grid multi-step: >= ~16 steps when the problem allows it
    # (dual-TC sharding on v7x + software pipelining even for small inputs).
    min_steps = 16
    need_row_steps = max(1, -(-min_steps // n_w))          # ceil(16 / n_w)
    steps_tr = max(8, R2 // need_row_steps)

    if row_tile is None:
        tr = min(cap_tr, steps_tr, 2048, R2)
    else:
        tr = int(row_tile)
    if R2 >= 8:
        tr = max(8, (min(tr, R2) // 8) * 8)                # multiple of 8
    else:
        tr = R2                                            # full (tiny) extent

    footprint = s_buf_bytes + tr * per_tr
    vmem_limit = int(min(vmem_cap,
                         max(32 * 1024 * 1024, footprint + 12 * 1024 * 1024)))

    # ---- operands, specs, grid --------------------------------------------
    x2 = x.reshape(R2, 2 * W)              # free contiguous view
    s_sum, s_sel = _make_sel_matrices(kw, x.dtype)

    out_shape = (
        jax.ShapeDtypeStruct((R2, W2), x.dtype),
        jax.ShapeDtypeStruct((R2, W2), x.dtype),
    )

    cost = pl.CostEstimate(
        flops=int(4 * R2 * W2 * kw),                       # two MXU matmuls
        transcendentals=0,
        bytes_accessed=int(R2 * (2 * W + 2 * W2) * itm + 2 * s_buf_bytes),
    )

    if split:
        nw = n_w
        grid = (pl.cdiv(R2, tr), nw)
        in_specs = [
            # even image rows: lanes [j*Wt, (j+1)*Wt) of x2
            pl.BlockSpec((tr, wt), lambda i, j: (i, j)),
            # odd image rows:  lanes [W + j*Wt, W + (j+1)*Wt) of x2
            pl.BlockSpec((tr, wt), lambda i, j: (i, j + nw)),
            # constant selection matrices: resident in VMEM across the grid
            pl.BlockSpec((wt, kw2), lambda i, j: (0, 0)),
            pl.BlockSpec((wt, kw2), lambda i, j: (0, 0)),
        ]
        out_specs = [
            pl.BlockSpec((tr, kw2), lambda i, j: (i, j)),  # L
            pl.BlockSpec((tr, kw2), lambda i, j: (i, j)),  # H
        ]
        kernel = _haar_split_kernel
        operands = (x2, x2, s_sum, s_sel)
        dims = ("parallel", "parallel")
    else:
        grid = (pl.cdiv(R2, tr),)
        in_specs = [
            pl.BlockSpec((tr, 2 * W), lambda i: (i, 0)),   # full row-pair strip
            pl.BlockSpec((W, W2), lambda i: (0, 0)),       # S_sum (resident)
            pl.BlockSpec((W, W2), lambda i: (0, 0)),       # S_sel (resident)
        ]
        out_specs = [
            pl.BlockSpec((tr, W2), lambda i: (i, 0)),      # L
            pl.BlockSpec((tr, W2), lambda i: (i, 0)),      # H
        ]
        kernel = _haar_full_kernel
        operands = (x2, s_sum, s_sel)
        dims = ("parallel",)

    L, Hd = pl.pallas_call(
        kernel,
        out_shape=out_shape,
        grid_spec=pltpu.PrefetchScalarGridSpec(
            num_scalar_prefetch=0,
            grid=grid,
            in_specs=in_specs,
            out_specs=out_specs,
        ),
        compiler_params=pltpu.CompilerParams(
            dimension_semantics=dims,
            vmem_limit_bytes=vmem_limit,
        ),
        cost_estimate=cost,
    )(*operands)

    return L.reshape(B, C, H2, W2), Hd.reshape(B, C, H2, W2)


def _reference(x):
    a = x[:, :, 0::2, 0::2]
    b = x[:, :, 0::2, 1::2]
    c = x[:, :, 1::2, 0::2]
    d = x[:, :, 1::2, 1::2]
    L = (a + b + c + d) * 0.5
    H = (3.0 * a - b - c - d) * 0.5
    return L, H


if __name__ == "__main__":
    key = jax.random.PRNGKey(0)
    # Small shapes consistent with the module's 4D NCHW contract.
    # (2,4,16,16) exercises the full-width fallback path; (1,2,32,256)
    # exercises the W-tiled split-spec path.
    for shape in ((2, 4, 16, 16), (1, 2, 32, 256)):
        x = jax.random.normal(key, shape, dtype=jnp.float32)
        L, Hd = first_order_wavelet_transform(x)
        L = jax.block_until_ready(L)
        Hd = jax.block_until_ready(Hd)

        L_ref, H_ref = _reference(x)
        b, c, h, w = shape
        assert L.shape == (b, c, h // 2, w // 2)
        assert Hd.shape == (b, c, h // 2, w // 2)
        assert jnp.allclose(L, L_ref, atol=1e-5, rtol=1e-5)
        assert jnp.allclose(Hd, H_ref, atol=1e-5, rtol=1e-5)

    print("KERNEL_OK")
</pallas_src>

<mosaic_0001>
module attributes {stable_mosaic.version = 11 : i64} {
  func.func @_haar_full_kernel(%arg0: i32, %arg1: memref<8x32xf32, #tpu.memory_space<vmem>>, %arg2: memref<16x8xf32, #tpu.memory_space<vmem>>, %arg3: memref<16x8xf32, #tpu.memory_space<vmem>>, %arg4: memref<8x8xf32, #tpu.memory_space<vmem>>, %arg5: memref<8x8xf32, #tpu.memory_space<vmem>>) attributes {dimension_semantics = [#tpu.dimension_semantics<parallel>], iteration_bounds = array<i64: 8>, scalar_prefetch = 0 : i64, scratch_operands = 0 : i64, tpu.core_type = #tpu.core_type<tc>, window_params = [{transform_indices = @transform_0, window_bounds = array<i64: 8, 32>}, {pipeline_mode = #tpu.pipeline_mode<synchronous>, transform_indices = @transform_1, window_bounds = array<i64: 16, 8>}, {pipeline_mode = #tpu.pipeline_mode<synchronous>, transform_indices = @transform_2, window_bounds = array<i64: 16, 8>}, {transform_indices = @transform_3, window_bounds = array<i64: 8, 8>}, {transform_indices = @transform_4, window_bounds = array<i64: 8, 8>}]} {
    %c0 = arith.constant 0 : index
    %c0_0 = arith.constant 0 : index
    %0 = vector.load %arg1[%c0, %c0_0] : memref<8x32xf32, #tpu.memory_space<vmem>>, vector<8x16xf32>
    %c0_1 = arith.constant 0 : index
    %c16 = arith.constant 16 : index
    %1 = vector.load %arg1[%c0_1, %c16] : memref<8x32xf32, #tpu.memory_space<vmem>>, vector<8x16xf32>
    %2 = arith.addf %0, %1 : vector<8x16xf32>
    %c0_2 = arith.constant 0 : index
    %c0_3 = arith.constant 0 : index
    %3 = vector.load %arg2[%c0_2, %c0_3] : memref<16x8xf32, #tpu.memory_space<vmem>>, vector<16x8xf32>
    %cst = arith.constant dense<0.000000e+00> : vector<8x8xf32>
    %4 = tpu.matmul %2, %3, %cst {dimension_numbers = #tpu.dot_dimension_numbers<[1], [0], [0], [1], [0, 0, 1, 1], [], []>, precision = #tpu.contract_precision<fp32>} : vector<8x16xf32>, vector<16x8xf32>, vector<8x8xf32> -> vector<8x8xf32>
    %c0_4 = arith.constant 0 : index
    %c0_5 = arith.constant 0 : index
    %5 = vector.load %arg3[%c0_4, %c0_5] : memref<16x8xf32, #tpu.memory_space<vmem>>, vector<16x8xf32>
    %cst_6 = arith.constant dense<0.000000e+00> : vector<8x8xf32>
    %6 = tpu.matmul %0, %5, %cst_6 {dimension_numbers = #tpu.dot_dimension_numbers<[1], [0], [0], [1], [0, 0, 1, 1], [], []>, precision = #tpu.contract_precision<fp32>} : vector<8x16xf32>, vector<16x8xf32>, vector<8x8xf32> -> vector<8x8xf32>
    %cst_7 = arith.constant 2.000000e+00 : f32
    %7 = vector.broadcast %cst_7 : f32 to vector<8x8xf32>
    %8 = arith.mulf %7, %6 : vector<8x8xf32>
    %9 = arith.subf %8, %4 : vector<8x8xf32>
    %c0_8 = arith.constant 0 : index
    %c0_9 = arith.constant 0 : index
    %10 = vector.load %arg4[%c0_8, %c0_9] : memref<8x8xf32, #tpu.memory_space<vmem>>, vector<8x8xf32>
    tpu.vector_store %arg4[%c0_8, %c0_9], %4 {strides = array<i32>} : memref<8x8xf32, #tpu.memory_space<vmem>>, vector<8x8xf32>,
    %c0_10 = arith.constant 0 : index
    %c0_11 = arith.constant 0 : index
    %11 = vector.load %arg5[%c0_10, %c0_11] : memref<8x8xf32, #tpu.memory_space<vmem>>, vector<8x8xf32>
    tpu.vector_store %arg5[%c0_10, %c0_11], %9 {strides = array<i32>} : memref<8x8xf32, #tpu.memory_space<vmem>>, vector<8x8xf32>,
    return
  }
  func.func @transform_0(%arg0: i32) -> (i32, i32) {
    %c0_i32 = arith.constant 0 : i32
    %c0_i32_0 = arith.constant 0 : i32
    return %arg0, %c0_i32 : i32, i32
  }
  func.func @transform_1(%arg0: i32) -> (i32, i32) {
    %c0_i32 = arith.constant 0 : i32
    %c0_i32_0 = arith.constant 0 : i32
    %c0_i32_1 = arith.constant 0 : i32
    return %c0_i32, %c0_i32_0 : i32, i32
  }
  func.func @transform_2(%arg0: i32) -> (i32, i32) {
    %c0_i32 = arith.constant 0 : i32
    %c0_i32_0 = arith.constant 0 : i32
    %c0_i32_1 = arith.constant 0 : i32
    return %c0_i32, %c0_i32_0 : i32, i32
  }
  func.func @transform_3(%arg0: i32) -> (i32, i32) {
    %c0_i32 = arith.constant 0 : i32
    %c0_i32_0 = arith.constant 0 : i32
    return %arg0, %c0_i32 : i32, i32
  }
  func.func @transform_4(%arg0: i32) -> (i32, i32) {
    %c0_i32 = arith.constant 0 : i32
    %c0_i32_0 = arith.constant 0 : i32
    return %arg0, %c0_i32 : i32, i32
  }
}

</mosaic_0001>

<bundles_post_ra>
// kernel: tpu_custom_call.1
= control target key start
LH: loop header
LB: loop body
LE: loop exit
PB: predicated region body
PF: predicated region fallthrough
CT: control target
= control target key end

     0   :  { %s1462_s15 = smov 0   ;;  %s1552_s0 = inlined_call_operand.vmem [shape: f32[64,32], index: 0, kind: input, shape index: {}]   ;;  %s1553_s1 = inlined_call_operand.vmem [shape: f32[16,8], index: 1, kind: input, shape index: {}]   ;;  %s1554_s2 = inlined_call_operand.vmem [shape: f32[16,8], index: 2, kind: input, shape index: {}]   ;;  %s1555_s3 = inlined_call_operand.vmem [shape: f32[64,8], index: 3, kind: output, shape index: {0}]   ;;  %s1556_s4 = inlined_call_operand.vmem [shape: f32[64,8], index: 4, kind: output, shape index: {1}]  }
   0x1 LB: > { %s1227_s16 = sadd.s32 4294967295, %s1431_s15   ;;  %p1231_p0 = scmp.ge.s32.totalorder %s1431_s15, 1  ;;  %s1431_s15 = sphi %s1462_s15, %s15_s15  }
   0x2   : > { %p164_p1 = scmp.lt.s32.totalorder %s1431_s15, 9 }
   0x4   : > { %p165_p2 = pnand %p1231_p0, %p164_p1 }
   0x5   : > { %p192_p3 = scmp.lt.s32.totalorder (!%p165_p2), %s1227_s16, 7  ;;  %v675_v0 = vld [vmem:[%s1554_s2] sm:$0xff] (!%p165_p2)  ;;  %v676_v1 = vld [vmem:[%s1554_s2 + $0x8] sm:$0xff] (!%p165_p2)  ;;  %v1433_v2 = vmov (!%p165_p2), 0.0|0.0   ;;  %vm1434_vm0 = vmmov (!%p165_p2), 0   ;;  %v1435_v7 = vmov (!%p165_p2), 0.0  }
   0x6   : > { %168 = sbr.rel (%p165_p2) target bundleno = 400 (0x190), region = 32  ;;  %1375 = vmatprep.subr.bf16.mxu1 (!%p165_p2), %v1433_v2  ;;  %v680_v3 = vand.u32 (!%p165_p2), 4294901760, %v675_v0  ;;  %v683_v4 = vand.u32 (!%p165_p2), 4294901760, %v676_v1  ;;  %1357 = vmatprep.subr.bf16.mxu0 (!%p165_p2), %v1433_v2  ;;  %v210_v5 = vld [vmem:[%s1553_s1] sm:$0xff] (!%p165_p2)  ;;  %v211_v6 = vld [vmem:[%s1553_s1 + $0x8] sm:$0xff] (!%p165_p2)  ;;  %vm212_vm1 = vcmask (!%p165_p2), 130048  }
   0x7   : > { %1319 = vmatprep.mubr.msk.f32.mxu1 (!%p165_p2), %vm1434_vm0, %v1435_v7  ;;  %v217_v8 = vand.u32 (!%p165_p2), 4294901760, %v210_v5  ;;  %v220_v9 = vand.u32 (!%p165_p2), 4294901760, %v211_v6  ;;  %1277 = vmatprep.mubr.msk.f32.mxu0 (!%p165_p2), %vm1434_vm0, %v1435_v7  ;;  %s1436_s29 = smov (!%p165_p2), 112   ;;  %vm1140_vm2 = vcmask (!%p165_p2), 64512  }
   0x8   : > { %v1376_v10 = vpack.c.bf16 (!%p165_p2), %v683_v4, %v680_v3  ;;  %v758_v11 = vsub.f32 (!%p165_p2), %v675_v0, %v680_v3  ;;  %v765_v12 = vsub.f32 (!%p165_p2), %v676_v1, %v683_v4 }
   0x9   : > { %v1490_v13 = vpack.c.bf16 (!%p165_p2), %v220_v9, %v217_v8  ;;  %v1492_v14 = vsub.f32 (!%p165_p2), %v210_v5, %v217_v8  ;;  %v1494_v15 = vsub.f32 (!%p165_p2), %v211_v6, %v220_v9 }
   0xa   : > { %1377 = vmatpush3.bf16.msra.mxu1 (!%p165_p2), %v1376_v10  ;;  %v759_v16 = vand.u32 (!%p165_p2), 4294901760, %v758_v11  ;;  %v766_v17 = vand.u32 (!%p165_p2), 4294901760, %v765_v12  ;;  %v1382_v38 = vpack.c.bf16 (!%p165_p2), %v765_v12, %v758_v11 }
   0xb   : > { %1378 = vmatprep.subr.bf16.mxu1 (!%p165_p2), %v1433_v2  ;;  %1359 = vmatpush3.bf16.msra.mxu0 (!%p165_p2), %v1490_v13  ;;  %v296_v19 = vand.u32 (!%p165_p2), 4294901760, %v1492_v14  ;;  %v303_v20 = vand.u32 (!%p165_p2), 4294901760, %v1494_v15  ;;  %v1364_v36 = vpack.c.bf16 (!%p165_p2), %v1494_v15, %v1492_v14 }
   0xc   : > { %v760_v22 = vsub.f32 (!%p165_p2), %v758_v11, %v759_v16  ;;  %v767_v23 = vsub.f32 (!%p165_p2), %v765_v12, %v766_v17  ;;  %1360 = vmatprep.subr.bf16.mxu0 (!%p165_p2), %v1433_v2  ;;  %v1388_v40 = vpack.c.bf16 (!%p165_p2), %v766_v17, %v759_v16 }
   0xd   : > { %s1558_s16 = smov (!%p192_p3, %s1227_s16), 7  ;;  %v297_v25 = vsub.f32 %v1492_v14, %v296_v19  ;;  %v304_v26 = vsub.f32 %v1494_v15, %v303_v20  ;;  %v1370_v39 = vpack.c.bf16 %v303_v20, %v296_v19 }
   0xe   : > { %s1488_s25 = sshll.u32 %s1558_s16, 3  ;;  %v761_v30 = vand.u32 4294901760, %v760_v22  ;;  %v768_v31 = vand.u32 4294901760, %v767_v23 }
   0xf   : > { %s195_s28 = scalar_lea.vmem %s1552_s0, %s1488_s25  ;;  %v298_v28 = vand.u32 4294901760, %v297_v25  ;;  %v305_v29 = vand.u32 4294901760, %v304_v26  ;;  %s199_s6 = scalar_lea.vmem %s1555_s3, %s1488_s25 }
  0x10   : > { %v204_v18 = vld [vmem:[%s195_s28] sm:$0xff]  ;;  %v1379_v35 = vpack.c.bf16 %v768_v31, %v761_v30  ;;  %s203_s9 = scalar_lea.vmem %s1556_s4, %s1488_s25 }
  0x11   : > { %206 = vrot.lane.b32.xlu0 %v204_v18, %s1436_s29  ;;  %v677_v21 = vsel %vm212_vm1, %v204_v18, 0  ;;  %v1361_v33 = vpack.c.bf16 %v305_v29, %v298_v28 }
  0x12   : > { %v746_v24 = vand.u32 4294901760, %v677_v21 }
  0x14   : > { %v747_v27 = vsub.f32 %v677_v21, %v746_v24 }
  0x16   : > { %v748_v32 = vand.u32 4294901760, %v747_v27 }
  0x18   : > { %v749_v34 = vsub.f32 %v747_v27, %v748_v32 }
  0x1a   : > { %v750_v37 = vand.u32 4294901760, %v749_v34 }
  0x1c   : > { %1320 = vmatmul.mubr.f32.vlgmr.msra.gmra.mrb[0].mxu1 %v750_v37 }
  0x1d   : > { %1380 = vmatpush3.bf16.msra.mxu1 %v1379_v35  ;;  %1326 = vmatprep.mubr.msk.f32.mxu1 %vm1434_vm0, %v1435_v7 }
  0x1e   : > { %1381 = vmatprep.subr.bf16.mxu1 %v1433_v2 }
  0x24   : > { %1327 = vmatmul.mubr.f32.vlgmr.msra.gmra.mrb[0].mxu1 %v746_v24 }
  0x25   : > { %1383 = vmatpush3.bf16.msra.mxu1 %v1382_v38  ;;  %1333 = vmatprep.mubr.msk.f32.mxu1 %vm1434_vm0, %v1435_v7 }
  0x26   : > { %1384 = vmatprep.subr.bf16.mxu1 %v1433_v2 }
  0x2c   : > { %1334 = vmatmul.mubr.f32.vlgmr.msra.gmra.mrb[0].mxu1 %v747_v27 }
  0x2d   : > { %1386 = vmatpush3.bf16.msra.mxu1 %v1376_v10  ;;  %1340 = vmatprep.mubr.msk.f32.mxu1 %vm1434_vm0, %v1435_v7 }
  0x2e   : > { %1387 = vmatprep.subr.bf16.mxu1 %v1433_v2 }
  0x34   : > { %1341 = vmatmul.mubr.f32.vlgmr.msra.gmra.mrb[0].mxu1 %v748_v32 }
  0x35   : > { %1389 = vmatpush3.bf16.msra.mxu1 %v1388_v40  ;;  %1347 = vmatprep.mubr.msk.f32.mxu1 %vm1434_vm0, %v1435_v7 }
  0x36   : > { %1390 = vmatprep.subr.bf16.mxu1 %v1433_v2 }
  0x3c   : > { %1348 = vmatmul.mubr.f32.vlgmr.msra.gmra.mrb[0].mxu1 %v746_v24 }
  0x3d   : > { %1392 = vmatpush3.bf16.msra.mxu1 %v1376_v10  ;;  %1354 = vmatprep.mubr.msk.f32.mxu1 %vm1434_vm0, %v1435_v7 }
  0x44   : > { %1355 = vmatmul.mubr.f32.vlgmr.msra.gmra.mrb[0].mxu1 %v746_v24 }
  0x83   : > { %v207_v41 = vpop.permute.xlu0 %206 }
  0x84   : > { %v209_v42 = vadd.f32 %v207_v41, %v204_v18 }
  0x86   : > { %v214_v43 = vsel %vm212_vm1, %v209_v42, 0 }
  0x87   : > { %v283_v44 = vand.u32 4294901760, %v214_v43 }
  0x89   : > { %v284_v45 = vsub.f32 %v214_v43, %v283_v44 }
  0x8b   : > { %v285_v46 = vand.u32 4294901760, %v284_v45 }
  0x8d   : > { %v286_v47 = vsub.f32 %v284_v45, %v285_v46 }
  0x8f   : > { %v287_v48 = vand.u32 4294901760, %v286_v47 }
  0x91   : > { %1278 = vmatmul.mubr.f32.vlgmr.msra.gmra.mrb[0].mxu0 %v287_v48 }
  0x92   : > { %1362 = vmatpush3.bf16.msra.mxu0 %v1361_v33  ;;  %1284 = vmatprep.mubr.msk.f32.mxu0 %vm1434_vm0, %v1435_v7 }
  0x93   : > { %1363 = vmatprep.subr.bf16.mxu0 %v1433_v2 }
  0x99   : > { %1285 = vmatmul.mubr.f32.vlgmr.msra.gmra.mrb[0].mxu0 %v283_v44 }
  0x9a   : > { %1365 = vmatpush3.bf16.msra.mxu0 %v1364_v36  ;;  %1291 = vmatprep.mubr.msk.f32.mxu0 %vm1434_vm0, %v1435_v7 }
  0x9b   : > { %1366 = vmatprep.subr.bf16.mxu0 %v1433_v2 }
  0xa1   : > { %1292 = vmatmul.mubr.f32.vlgmr.msra.gmra.mrb[0].mxu0 %v284_v45 }
  0xa2   : > { %1368 = vmatpush3.bf16.msra.mxu0 %v1490_v13  ;;  %1298 = vmatprep.mubr.msk.f32.mxu0 %vm1434_vm0, %v1435_v7 }
  0xa3   : > { %1369 = vmatprep.subr.bf16.mxu0 %v1433_v2 }
  0xa9   : > { %1299 = vmatmul.mubr.f32.vlgmr.msra.gmra.mrb[0].mxu0 %v285_v46 }
  0xaa   : > { %1371 = vmatpush3.bf16.msra.mxu0 %v1370_v39  ;;  %1305 = vmatprep.mubr.msk.f32.mxu0 %vm1434_vm0, %v1435_v7 }
  0xab   : > { %1372 = vmatprep.subr.bf16.mxu0 %v1433_v2 }
  0xb1   : > { %1306 = vmatmul.mubr.f32.vlgmr.msra.gmra.mrb[0].mxu0 %v283_v44 }
  0xb2   : > { %1374 = vmatpush3.bf16.msra.mxu0 %v1490_v13  ;;  %1312 = vmatprep.mubr.msk.f32.mxu0 %vm1434_vm0, %v1435_v7 }
  0xb9   : > { %1313 = vmatmul.mubr.f32.vlgmr.msra.gmra.mrb[0].mxu0 %v283_v44 }
 0x117   : > { %v1134_v49 = vpop.f32.mrb[0].mxu1 }
 0x118   : > { %v1356_v50 = vpop.f32.mrb[1].mxu1  ;;  %v1138_v51 = vmul.f32 2.0, %v1134_v49 }
 0x18c   : > { %v671_v52 = vpop.f32.mrb[0].mxu0 }
 0x18d   : > { %v1139_v53 = vsub.f32 %v1138_v51, %v671_v52  ;;  %1141 = vst.msk [vmem:[%s199_s6] sm:$0xff] %vm1140_vm2, %v671_v52  ;;  %v1314_v54 = vpop.f32.mrb[1].mxu0 }
 0x18f   : > { %1142 = vst.msk [vmem:[%s203_s9] sm:$0xff] %vm1140_vm2, %v1139_v53 }
 0x190 PF: > { %s15_s15 = sadd.s32 1, %s1431_s15  }
 0x191   : > { %p12_p4 = scmp.ge.s32.totalorder %s15_s15, 10  }
 0x193   :  { %14 = sbr.rel (!%p12_p4) target bundleno = 1 (0x1), region = 74 }

</bundles_post_ra>
